<compile_context>
chip_gen: v7x
topology: tpu7x:2x2x1
jax: 0.10.0
libtpu: 0.0.40
codegen_flags: <defaults>
</compile_context>

<pallas_src>
import jax
import jax.numpy as jnp
from jax.experimental import pallas as pl
from jax.experimental.pallas import tpu as pltpu

IN_DIM = 28 * 28   # 784
HID = 128
LATENT = 32
OUT_PAD = 896      # 7 * 128, lane-dense padded output width


def _round_up(x, m):
    return ((x + m - 1) // m) * m


def autoencoder_kernel(x_ref, w1_ref, b1_ref, w23_ref, b23_ref, w4_ref, b4_ref,
                       out_ref):
    # Biases read once (f32, (1, N) rows so they broadcast over the batch tile).
    b1 = b1_ref[...]
    b23 = b23_ref[...]
    b4 = b4_ref[...]

    # Encoder: Linear(784 -> 128) + ReLU   (bf16 operands, f32 accumulation)
    h = jnp.dot(x_ref[...], w1_ref[...], preferred_element_type=jnp.float32) + b1
    h = jnp.maximum(h, 0.0)

    # Fused Linear(128 -> 32) -> Linear(32 -> 128), then ReLU
    d = jnp.dot(h.astype(jnp.bfloat16), w23_ref[...],
                preferred_element_type=jnp.float32) + b23
    d = jnp.maximum(d, 0.0)

    # Decoder: Linear(128 -> 784, padded to 896) + Sigmoid
    y = jnp.dot(d.astype(jnp.bfloat16), w4_ref[...],
                preferred_element_type=jnp.float32) + b4
    out_ref[...] = jax.nn.sigmoid(y)


def autoencoder_forward(x_nchw, params, tile_b=256):
    """x_nchw: (B, 1, 28, 28) float32. Returns (B, 1, 28, 28) float32."""
    B = x_nchw.shape[0]
    x_flat = x_nchw.reshape(B, IN_DIM).astype(jnp.bfloat16)

    w1, b1, w2, b2, w3, b3, w4, b4 = params

    # --- one-time (per-call) param prep in f32, then cast to bf16 for the MXU ---
    # Fuse the activation-free middle pair: z = h@W2+b2; d_in = z@W3+b3
    #   => d_in = h @ (W2@W3) + (b2@W3 + b3)
    w23 = w2 @ w3                 # (128, 128)
    b23 = b2 @ w3 + b3            # (128,)

    # Pad the final layer's output dim 784 -> 896 for lane-dense stores.
    w4p = jnp.zeros((HID, OUT_PAD), jnp.float32).at[:, :IN_DIM].set(w4)
    b4p = jnp.zeros((OUT_PAD,), jnp.float32).at[:IN_DIM].set(b4)

    w1b = w1.astype(jnp.bfloat16)
    w23b = w23.astype(jnp.bfloat16)
    w4b = w4p.astype(jnp.bfloat16)
    b1r = b1.reshape(1, HID)
    b23r = b23.reshape(1, HID)
    b4r = b4p.reshape(1, OUT_PAD)

    # --- batch tiling: big multiple-of-8 tiles, pad B up to a tile multiple ---
    tile_b = min(tile_b, _round_up(B, 8))
    pad_b = _round_up(B, tile_b)
    if pad_b != B:
        x_flat = jnp.pad(x_flat, ((0, pad_b - B), (0, 0)))
    grid = (pl.cdiv(pad_b, tile_b),)

    in_specs = [
        pl.BlockSpec((tile_b, IN_DIM), lambda i: (i, 0)),   # x tile
        pl.BlockSpec((IN_DIM, HID), lambda i: (0, 0)),      # w1 (resident)
        pl.BlockSpec((1, HID), lambda i: (0, 0)),           # b1
        pl.BlockSpec((HID, HID), lambda i: (0, 0)),         # w23
        pl.BlockSpec((1, HID), lambda i: (0, 0)),           # b23
        pl.BlockSpec((HID, OUT_PAD), lambda i: (0, 0)),     # w4 (padded)
        pl.BlockSpec((1, OUT_PAD), lambda i: (0, 0)),       # b4 (padded)
    ]
    out_spec = pl.BlockSpec((tile_b, OUT_PAD), lambda i: (i, 0))

    out_flat = pl.pallas_call(
        autoencoder_kernel,
        out_shape=jax.ShapeDtypeStruct((pad_b, OUT_PAD), jnp.float32),
        grid=grid,
        in_specs=in_specs,
        out_specs=out_spec,
        compiler_params=pltpu.CompilerParams(
            dimension_semantics=("parallel",)),
    )(x_flat, w1b, b1r, w23b, b23r, w4b, b4r)

    return out_flat[:B, :IN_DIM].reshape(B, 1, 28, 28)


def init_params(key):
    """Deterministic synthetic init matching nn.Linear shapes.

    torch stores Linear weights as (out, in); we store the transpose (in, out)
    so the kernel computes x @ W + b with identical math.
    """
    ks = jax.random.split(key, 8)

    def linear(kw, kb, fan_in, fan_out):
        bound = 1.0 / (fan_in ** 0.5)
        w = jax.random.uniform(kw, (fan_in, fan_out), jnp.float32, -bound, bound)
        b = jax.random.uniform(kb, (fan_out,), jnp.float32, -bound, bound)
        return w, b

    w1, b1 = linear(ks[0], ks[1], IN_DIM, HID)     # encoder Linear(784, 128)
    w2, b2 = linear(ks[2], ks[3], HID, LATENT)     # encoder Linear(128, 32)
    w3, b3 = linear(ks[4], ks[5], LATENT, HID)     # decoder Linear(32, 128)
    w4, b4 = linear(ks[6], ks[7], HID, IN_DIM)     # decoder Linear(128, 784)
    return (w1, b1, w2, b2, w3, b3, w4, b4)


def reference_forward(x_nchw, params):
    """Pure-f32 reference matching the PyTorch module exactly (no fusion)."""
    w1, b1, w2, b2, w3, b3, w4, b4 = params
    x = x_nchw.reshape(x_nchw.shape[0], IN_DIM)
    h = jnp.maximum(x @ w1 + b1, 0.0)
    z = h @ w2 + b2
    d = jnp.maximum(z @ w3 + b3, 0.0)
    y = jax.nn.sigmoid(d @ w4 + b4)
    return y.reshape(-1, 1, 28, 28)


if __name__ == "__main__":
    key = jax.random.PRNGKey(0)
    k_params, k_x = jax.random.split(key)

    params = init_params(k_params)
    x = jax.random.normal(k_x, (8, 1, 28, 28), dtype=jnp.float32)

    out = autoencoder_forward(x, params)
    out = jax.block_until_ready(out)

    ref = reference_forward(x, params)
    assert out.shape == (8, 1, 28, 28), out.shape
    # bf16 matmul operands (f32 accumulation) vs pure-f32 reference.
    max_err = float(jnp.max(jnp.abs(out - ref)))
    assert max_err < 3e-2, max_err

    print("KERNEL_OK")
</pallas_src>

<mosaic_0001>
module attributes {stable_mosaic.version = 11 : i64} {
  func.func @autoencoder_kernel(%arg0: i32, %arg1: memref<8x784xbf16, #tpu.memory_space<vmem>>, %arg2: memref<784x128xbf16, #tpu.memory_space<vmem>>, %arg3: memref<1x128xf32, #tpu.memory_space<vmem>>, %arg4: memref<128x128xbf16, #tpu.memory_space<vmem>>, %arg5: memref<1x128xf32, #tpu.memory_space<vmem>>, %arg6: memref<128x896xbf16, #tpu.memory_space<vmem>>, %arg7: memref<1x896xf32, #tpu.memory_space<vmem>>, %arg8: memref<8x896xf32, #tpu.memory_space<vmem>>) attributes {dimension_semantics = [#tpu.dimension_semantics<parallel>], iteration_bounds = array<i64: 1>, scalar_prefetch = 0 : i64, scratch_operands = 0 : i64, tpu.core_type = #tpu.core_type<tc>, window_params = [{transform_indices = @transform_0, window_bounds = array<i64: 8, 784>}, {pipeline_mode = #tpu.pipeline_mode<synchronous>, transform_indices = @transform_1, window_bounds = array<i64: 784, 128>}, {pipeline_mode = #tpu.pipeline_mode<synchronous>, transform_indices = @transform_2, window_bounds = array<i64: 1, 128>}, {pipeline_mode = #tpu.pipeline_mode<synchronous>, transform_indices = @transform_3, window_bounds = array<i64: 128, 128>}, {pipeline_mode = #tpu.pipeline_mode<synchronous>, transform_indices = @transform_4, window_bounds = array<i64: 1, 128>}, {pipeline_mode = #tpu.pipeline_mode<synchronous>, transform_indices = @transform_5, window_bounds = array<i64: 128, 896>}, {pipeline_mode = #tpu.pipeline_mode<synchronous>, transform_indices = @transform_6, window_bounds = array<i64: 1, 896>}, {transform_indices = @transform_7, window_bounds = array<i64: 8, 896>}]} {
    %c0 = arith.constant 0 : index
    %c0_0 = arith.constant 0 : index
    %0 = vector.load %arg3[%c0, %c0_0] : memref<1x128xf32, #tpu.memory_space<vmem>>, vector<1x128xf32>
    %c0_1 = arith.constant 0 : index
    %c0_2 = arith.constant 0 : index
    %1 = vector.load %arg5[%c0_1, %c0_2] : memref<1x128xf32, #tpu.memory_space<vmem>>, vector<1x128xf32>
    %c0_3 = arith.constant 0 : index
    %c0_4 = arith.constant 0 : index
    %2 = vector.load %arg7[%c0_3, %c0_4] : memref<1x896xf32, #tpu.memory_space<vmem>>, vector<1x896xf32>
    %c0_5 = arith.constant 0 : index
    %c0_6 = arith.constant 0 : index
    %3 = vector.load %arg1[%c0_5, %c0_6] : memref<8x784xbf16, #tpu.memory_space<vmem>>, vector<8x784xbf16>
    %c0_7 = arith.constant 0 : index
    %c0_8 = arith.constant 0 : index
    %4 = vector.load %arg2[%c0_7, %c0_8] : memref<784x128xbf16, #tpu.memory_space<vmem>>, vector<784x128xbf16>
    %cst = arith.constant dense<0.000000e+00> : vector<8x128xf32>
    %5 = tpu.matmul %3, %4, %cst {dimension_numbers = #tpu.dot_dimension_numbers<[1], [0], [0], [1], [0, 0, 1, 1], [], []>} : vector<8x784xbf16>, vector<784x128xbf16>, vector<8x128xf32> -> vector<8x128xf32>
    %6 = vector.broadcast %0 : vector<1x128xf32> to vector<8x128xf32>
    %7 = arith.addf %5, %6 : vector<8x128xf32>
    %cst_9 = arith.constant 0.000000e+00 : f32
    %8 = vector.broadcast %cst_9 : f32 to vector<8x128xf32>
    %9 = arith.maximumf %7, %8 : vector<8x128xf32>
    %10 = arith.truncf %9 : vector<8x128xf32> to vector<8x128xbf16>
    %c0_10 = arith.constant 0 : index
    %c0_11 = arith.constant 0 : index
    %11 = vector.load %arg4[%c0_10, %c0_11] : memref<128x128xbf16, #tpu.memory_space<vmem>>, vector<128x128xbf16>
    %cst_12 = arith.constant dense<0.000000e+00> : vector<8x128xf32>
    %12 = tpu.matmul %10, %11, %cst_12 {dimension_numbers = #tpu.dot_dimension_numbers<[1], [0], [0], [1], [0, 0, 1, 1], [], []>} : vector<8x128xbf16>, vector<128x128xbf16>, vector<8x128xf32> -> vector<8x128xf32>
    %13 = vector.broadcast %1 : vector<1x128xf32> to vector<8x128xf32>
    %14 = arith.addf %12, %13 : vector<8x128xf32>
    %cst_13 = arith.constant 0.000000e+00 : f32
    %15 = vector.broadcast %cst_13 : f32 to vector<8x128xf32>
    %16 = arith.maximumf %14, %15 : vector<8x128xf32>
    %17 = arith.truncf %16 : vector<8x128xf32> to vector<8x128xbf16>
    %c0_14 = arith.constant 0 : index
    %c0_15 = arith.constant 0 : index
    %18 = vector.load %arg6[%c0_14, %c0_15] : memref<128x896xbf16, #tpu.memory_space<vmem>>, vector<128x896xbf16>
    %cst_16 = arith.constant dense<0.000000e+00> : vector<8x896xf32>
    %19 = tpu.matmul %17, %18, %cst_16 {dimension_numbers = #tpu.dot_dimension_numbers<[1], [0], [0], [1], [0, 0, 1, 1], [], []>} : vector<8x128xbf16>, vector<128x896xbf16>, vector<8x896xf32> -> vector<8x896xf32>
    %20 = vector.broadcast %2 : vector<1x896xf32> to vector<8x896xf32>
    %21 = arith.addf %19, %20 : vector<8x896xf32>
    %22 = arith.negf %21 : vector<8x896xf32>
    %23 = math.exp %22 : vector<8x896xf32>
    %cst_17 = arith.constant 1.000000e+00 : f32
    %24 = vector.broadcast %cst_17 : f32 to vector<8x896xf32>
    %25 = arith.addf %24, %23 : vector<8x896xf32>
    %26 = arith.divf %24, %25 : vector<8x896xf32>
    %c0_18 = arith.constant 0 : index
    %c0_19 = arith.constant 0 : index
    %27 = vector.load %arg8[%c0_18, %c0_19] : memref<8x896xf32, #tpu.memory_space<vmem>>, vector<8x896xf32>
    tpu.vector_store %arg8[%c0_18, %c0_19], %26 {strides = array<i32>} : memref<8x896xf32, #tpu.memory_space<vmem>>, vector<8x896xf32>,
    return
  }
  func.func @transform_0(%arg0: i32) -> (i32, i32) {
    %c0_i32 = arith.constant 0 : i32
    %c0_i32_0 = arith.constant 0 : i32
    return %arg0, %c0_i32 : i32, i32
  }
  func.func @transform_1(%arg0: i32) -> (i32, i32) {
    %c0_i32 = arith.constant 0 : i32
    %c0_i32_0 = arith.constant 0 : i32
    %c0_i32_1 = arith.constant 0 : i32
    return %c0_i32, %c0_i32_0 : i32, i32
  }
  func.func @transform_2(%arg0: i32) -> (i32, i32) {
    %c0_i32 = arith.constant 0 : i32
    %c0_i32_0 = arith.constant 0 : i32
    %c0_i32_1 = arith.constant 0 : i32
    return %c0_i32, %c0_i32_0 : i32, i32
  }
  func.func @transform_3(%arg0: i32) -> (i32, i32) {
    %c0_i32 = arith.constant 0 : i32
    %c0_i32_0 = arith.constant 0 : i32
    %c0_i32_1 = arith.constant 0 : i32
    return %c0_i32, %c0_i32_0 : i32, i32
  }
  func.func @transform_4(%arg0: i32) -> (i32, i32) {
    %c0_i32 = arith.constant 0 : i32
    %c0_i32_0 = arith.constant 0 : i32
    %c0_i32_1 = arith.constant 0 : i32
    return %c0_i32, %c0_i32_0 : i32, i32
  }
  func.func @transform_5(%arg0: i32) -> (i32, i32) {
    %c0_i32 = arith.constant 0 : i32
    %c0_i32_0 = arith.constant 0 : i32
    %c0_i32_1 = arith.constant 0 : i32
    return %c0_i32, %c0_i32_0 : i32, i32
  }
  func.func @transform_6(%arg0: i32) -> (i32, i32) {
    %c0_i32 = arith.constant 0 : i32
    %c0_i32_0 = arith.constant 0 : i32
    %c0_i32_1 = arith.constant 0 : i32
    return %c0_i32, %c0_i32_0 : i32, i32
  }
  func.func @transform_7(%arg0: i32) -> (i32, i32) {
    %c0_i32 = arith.constant 0 : i32
    %c0_i32_0 = arith.constant 0 : i32
    return %arg0, %c0_i32 : i32, i32
  }
}

</mosaic_0001>

<bundles_post_ra>
// kernel: tpu_custom_call.1
= control target key start
LH: loop header
LB: loop body
LE: loop exit
PB: predicated region body
PF: predicated region fallthrough
CT: control target
= control target key end

     0   :  { %12 = vsyncpa [#allocation3], 0  ;;  %s2119_s0 = inlined_call_operand.hbm [shape: bf16[8,784], index: 0, kind: input, shape index: {}]   ;;  %s2120_s1 = inlined_call_operand.hbm [shape: bf16[784,128], index: 1, kind: input, shape index: {}]   ;;  %s2121_s2 = inlined_call_operand.vmem [shape: f32[1,128], index: 2, kind: input, shape index: {}]   ;;  %s2122_s3 = inlined_call_operand.hbm [shape: bf16[128,128], index: 3, kind: input, shape index: {}]   ;;  %s2123_s4 = inlined_call_operand.vmem [shape: f32[1,128], index: 4, kind: input, shape index: {}]   ;;  %s2124_s5 = inlined_call_operand.hbm [shape: bf16[128,896], index: 5, kind: input, shape index: {}]   ;;  %s2125_s6 = inlined_call_operand.vmem [shape: f32[1,896], index: 6, kind: input, shape index: {}]   ;;  %s2126_s7 = inlined_call_operand.hbm [shape: f32[8,896], index: 7, kind: output, shape index: {}]  }
   0x1   :  { %13 = vsyncpa [#allocation6], 0 }
   0x2   :  { %14 = vsyncpa [#allocation9], 0 }
   0x3   :  { %15 = vsyncpa [#allocation4], 0  ;;  %s1969_s24 = smov [#allocation5]   ;;  %s1851_s28 = scalar_lea.hbm %s2120_s1, 6272 }
   0x4   :  { %s31_s25 = sshll.u32 %s1969_s24, 4  ;;  %p1852_p0 = scmp.ne.s32.totalorder %s2120_s1, %s1851_s28  ;;  %s32_s25 = int_to_ptr.vmem [resolvable:$true] %s31_s25 }
   0x5   :  { %p1855_p1 = scmp.lt.u32.totalorder %s1851_s28, %s2120_s1 }
   0x7   :  { %p1857_p2 = pnand %p1855_p1, %p1852_p0 }
   0x9   :  { %1860 = shalt.err (!%p1857_p2)
}
   0xa   :  { %s1861_s10 = scalar_lea.vmem %s32_s25, 6272  ;;  %p1866_p4 = scmp.lt.s32.totalorder %s32_s25, %s32_s25 }
   0xb   :  { %p1862_p3 = scmp.ne.s32.totalorder %s32_s25, %s1861_s10  ;;  %p1867_p5 = scmp.lt.s32.totalorder %s1861_s10, %s1861_s10 }
   0xd   :  { %p1868_p6 = por %p1867_p5, %p1866_p4 }
   0xf   :  { %p1869_p7 = pnand %p1868_p6, %p1862_p3 }
  0x11   :  { %1872 = shalt.err (!%p1869_p7)
}
  0x12   :  { %s1970_s11 = smov 64   ;;  %s1971_s12 = smov 4  }
  0x13   :  { %37 = dma.hbm_to_vmem [thread:$0]  %s2120_s1, 6272, %s32_s25, [#allocation6], %s1970_s11, %s1970_s11, %s1971_s12  }
  0x14   :  { %s1972_s15 = smov [#allocation2]   ;;  %s1973_s17 = smov [#allocation7]  }
  0x15   :  { %s22_s16 = sshll.u32 %s1972_s15, 4  ;;  %s45_s18 = sshll.u32 %s1973_s17, 4  ;;  %s23_s16 = int_to_ptr.vmem [resolvable:$true] %s22_s16  ;;  %s46_s18 = int_to_ptr.vmem [resolvable:$true] %s45_s18 }
  0x16   :  { %s1873_s21 = scalar_lea.hbm %s2119_s0, 448 }
  0x17   :  { %p1874_p8 = scmp.ne.s32.totalorder %s2119_s0, %s1873_s21  ;;  %p1877_p9 = scmp.lt.u32.totalorder %s1873_s21, %s2119_s0 }
  0x19   :  { %p1879_p10 = pnand %p1877_p9, %p1874_p8 }
  0x1b   :  { %1882 = shalt.err (!%p1879_p10)
}
  0x1c   :  { %s1883_s1 = scalar_lea.vmem %s23_s16, 448  ;;  %p1888_p12 = scmp.lt.s32.totalorder %s23_s16, %s23_s16 }
  0x1d   :  { %p1884_p11 = scmp.ne.s32.totalorder %s23_s16, %s1883_s1  ;;  %p1889_p13 = scmp.lt.s32.totalorder %s1883_s1, %s1883_s1 }
  0x1f   :  { %p1890_p0 = por %p1889_p13, %p1888_p12 }
  0x21   :  { %p1891_p1 = pnand %p1890_p0, %p1884_p11 }
  0x23   :  { %1894 = shalt.err (!%p1891_p1)
}
  0x24   :  { %25 = dma.hbm_to_vmem [thread:$0]  %s2119_s0, 448, %s23_s16, [#allocation3]  }
  0x25   :  { %s1895_s30 = scalar_lea.hbm %s2122_s3, 1024 }
  0x26   :  { %p1896_p2 = scmp.ne.s32.totalorder %s2122_s3, %s1895_s30  ;;  %p1899_p3 = scmp.lt.u32.totalorder %s1895_s30, %s2122_s3 }
  0x28   :  { %p1901_p4 = pnand %p1899_p3, %p1896_p2 }
  0x2a   :  { %1904 = shalt.err (!%p1901_p4)
}
  0x2b   :  { %s1905_s14 = scalar_lea.vmem %s46_s18, 1024  ;;  %p1910_p6 = scmp.lt.s32.totalorder %s46_s18, %s46_s18 }
  0x2c   :  { %p1906_p5 = scmp.ne.s32.totalorder %s46_s18, %s1905_s14  ;;  %p1911_p7 = scmp.lt.s32.totalorder %s1905_s14, %s1905_s14 }
  0x2e   :  { %p1912_p8 = por %p1911_p7, %p1910_p6 }
  0x30   :  { %p1913_p9 = pnand %p1912_p8, %p1906_p5 }
  0x32   :  { %1916 = shalt.err (!%p1913_p9)
}
  0x33   :  { %51 = dma.hbm_to_vmem [thread:$0]  %s2122_s3, 1024, %s46_s18, [#allocation6], %s1970_s11, %s1970_s11, %s1971_s12  }
  0x34   :  { %s1974_s16 = smov [#allocation8]   ;;  %s1917_s21 = scalar_lea.hbm %s2124_s5, 7168 }
  0x35   :  { %s59_s17 = sshll.u32 %s1974_s16, 4  ;;  %p1918_p10 = scmp.ne.s32.totalorder %s2124_s5, %s1917_s21  ;;  %s60_s17 = int_to_ptr.vmem [resolvable:$true] %s59_s17 }
  0x36   :  { %p1921_p11 = scmp.lt.u32.totalorder %s1917_s21, %s2124_s5 }
  0x38   :  { %p1923_p12 = pnand %p1921_p11, %p1918_p10 }
  0x3a   :  { %1926 = shalt.err (!%p1923_p12)
}
  0x3b   :  { %s1927_s1 = scalar_lea.vmem %s60_s17, 7168  ;;  %p1932_p0 = scmp.lt.s32.totalorder %s60_s17, %s60_s17 }
  0x3c   :  { %p1928_p13 = scmp.ne.s32.totalorder %s60_s17, %s1927_s1  ;;  %p1933_p1 = scmp.lt.s32.totalorder %s1927_s1, %s1927_s1 }
  0x3e   :  { %p1934_p2 = por %p1933_p1, %p1932_p0 }
  0x40   :  { %p1935_p3 = pnand %p1934_p2, %p1928_p13 }
  0x42   :  { %1938 = shalt.err (!%p1935_p3)
}
  0x43   :  { %s1975_s3 = smov 448   ;;  %s1976_s11 = smov 28  }
  0x44   :  { %65 = dma.hbm_to_vmem [thread:$0]  %s2124_s5, 7168, %s60_s17, [#allocation9], %s1975_s3, %s1975_s3, %s1976_s11  }
  0x45   :  { %1961 = dma.done.wait [#allocation3], 448  }
  0x46   :  { %1962 = vsyncadd [#allocation3], 4294966848 }
  0x47   :  { %1963 = dma.done.wait [#allocation6], 7296  }
  0x48   :  { %1964 = vsyncadd [#allocation6], 4294960000 }
  0x49   :  { %1965 = dma.done.wait [#allocation9], 7168  }
  0x4a   :  { %1966 = vsyncadd [#allocation9], 4294960128  ;;  %v1679_v0 = vld [vmem:[#allocation5 + $0x40] sm:$0xff]   ;;  %v1683_v4 = vld [vmem:[#allocation5 + $0x48] sm:$0xff]   ;;  %v1977_v43 = vmov 0.0   ;;  %vm1978_vm0 = vmmov 0  }
  0x4b   :  { %v1680_v1 = vld [vmem:[#allocation5] sm:$0xff]   ;;  %1535 = vmatprep.subr.bf16.mxu0 %v1679_v0  ;;  %v1684_v5 = vld [vmem:[#allocation5 + $0x8] sm:$0xff]   ;;  %v1687_v8 = vld [vmem:[#allocation5 + $0x50] sm:$0xff]   ;;  %vm510_vm1 = vcmask 130048  }
  0x4c   :  { %v1681_v2 = vld [vmem:[#allocation5 + $0xc0] sm:$0xff]   ;;  %1536 = vmatpush3.bf16.msra.mxu0 %v1680_v1  ;;  %v1685_v6 = vld [vmem:[#allocation5 + $0xc8] sm:$0xff]   ;;  %v1688_v9 = vld [vmem:[#allocation5 + $0x10] sm:$0xff]  }
  0x4d   :  { %v1682_v3 = vld [vmem:[#allocation5 + $0x80] sm:$0xff]   ;;  %1557 = vmatprep.subr.bf16.mxu1 %v1681_v2  ;;  %1537 = vmatprep.subr.bf16.mxu0 %v1683_v4  ;;  %v1686_v7 = vld [vmem:[#allocation5 + $0x88] sm:$0xff]   ;;  %v1689_v10 = vld [vmem:[#allocation5 + $0xd0] sm:$0xff]  }
  0x4e   :  { %1558 = vmatpush3.bf16.msra.mxu1 %v1682_v3  ;;  %v1690_v11 = vld [vmem:[#allocation5 + $0x90] sm:$0xff]   ;;  %v1691_v12 = vld [vmem:[#allocation5 + $0x58] sm:$0xff]   ;;  %v1695_v16 = vld [vmem:[#allocation5 + $0x60] sm:$0xff]  }
  0x4f   :  { %1559 = vmatprep.subr.bf16.mxu1 %v1685_v6  ;;  %v1692_v13 = vld [vmem:[#allocation5 + $0x18] sm:$0xff]   ;;  %v1696_v17 = vld [vmem:[#allocation5 + $0x20] sm:$0xff]   ;;  %v1699_v20 = vld [vmem:[#allocation5 + $0x68] sm:$0xff]  }
  0x50   :  { %1538 = vmatpush3.bf16.msra.mxu0 %v1684_v5  ;;  %v1693_v14 = vld [vmem:[#allocation5 + $0xd8] sm:$0xff]   ;;  %v1697_v18 = vld [vmem:[#allocation5 + $0xe0] sm:$0xff]   ;;  %v1700_v21 = vld [vmem:[#allocation5 + $0x28] sm:$0xff]  }
  0x51   :  { %1539 = vmatprep.subr.bf16.mxu0 %v1687_v8  ;;  %v1694_v15 = vld [vmem:[#allocation5 + $0x98] sm:$0xff]   ;;  %v1698_v19 = vld [vmem:[#allocation5 + $0xa0] sm:$0xff]   ;;  %v1701_v22 = vld [vmem:[#allocation5 + $0xe8] sm:$0xff]  }
  0x52   :  { %1560 = vmatpush3.bf16.msra.mxu1 %v1686_v7  ;;  %v1702_v23 = vld [vmem:[#allocation5 + $0xa8] sm:$0xff]   ;;  %v1703_v24 = vld [vmem:[#allocation5 + $0x70] sm:$0xff]   ;;  %v1707_v28 = vld [vmem:[#allocation5 + $0x78] sm:$0xff]  }
  0x53   :  { %1561 = vmatprep.subr.bf16.mxu1 %v1689_v10  ;;  %v1704_v25 = vld [vmem:[#allocation5 + $0x30] sm:$0xff]   ;;  %v1708_v29 = vld [vmem:[#allocation5 + $0x38] sm:$0xff]   ;;  %v84_v31 = vld [vmem:[#allocation2] sm:$0xff] }
  0x54   :  { %1540 = vmatpush3.bf16.msra.mxu0 %v1688_v9  ;;  %v1705_v26 = vld [vmem:[#allocation5 + $0xf0] sm:$0xff]   ;;  %v1709_v30 = vld [vmem:[#allocation5 + $0xf8] sm:$0xff]   ;;  %v1406_v32 = vcombine.low %v84_v31, %v84_v31  ;;  %v1407_v33 = vcombine.high %v84_v31, %v84_v31  ;;  %v1713_v35 = vld [vmem:[#allocation5 + $0x140] sm:$0xff]  }
  0x55   :  { %1541 = vmatprep.subr.bf16.mxu0 %v1691_v12  ;;  %v1706_v27 = vld [vmem:[#allocation5 + $0xb0] sm:$0xff]   ;;  %v1712_v34 = vld [vmem:[#allocation5 + $0xb8] sm:$0xff]   ;;  %v1716_v39 = vld [vmem:[#allocation5 + $0x100] sm:$0xff]  }
  0x56   :  { %1562 = vmatpush3.bf16.msra.mxu1 %v1690_v11  ;;  %v85_v36 = vld [vmem:[#allocation2 + $0x8] sm:$0xff]  ;;  %546 = vmatprep.mubr.bf16.mxu0 %v1407_v33  ;;  %v1721_v45 = vld [vmem:[#allocation5 + $0x158] sm:$0xff]   ;;  %v1723_v47 = vld [vmem:[#allocation5 + $0x160] sm:$0xff]  }
  0x57   :  { %1563 = vmatprep.subr.bf16.mxu1 %v1693_v14  ;;  %v1408_v37 = vcombine.low %v85_v36, %v85_v36  ;;  %v1409_v38 = vcombine.high %v85_v36, %v85_v36  ;;  %v1717_v40 = vld [vmem:[#allocation5 + $0x148] sm:$0xff]   ;;  %v1719_v42 = vld [vmem:[#allocation5 + $0x150] sm:$0xff]   ;;  %v1722_v46 = vld [vmem:[#allocation5 + $0x118] sm:$0xff]  }
  0x58   :  { %1542 = vmatpush3.bf16.msra.mxu0 %v1692_v13  ;;  %v1718_v41 = vld [vmem:[#allocation5 + $0x108] sm:$0xff]   ;;  %v1720_v44 = vld [vmem:[#allocation5 + $0x110] sm:$0xff]   ;;  %v1724_v48 = vld [vmem:[#allocation5 + $0x120] sm:$0xff]  }
  0x59   :  { %1543 = vmatprep.subr.bf16.mxu0 %v1695_v16  ;;  %586 = vmatprep.mubr.bf16.mxu1 %v1409_v38  ;;  %v1725_v49 = vld [vmem:[#allocation5 + $0x168] sm:$0xff]   ;;  %v1731_v50 = vld [vmem:[#allocation5 + $0x180] sm:$0xff]   ;;  %v86_v51 = vld [vmem:[#allocation2 + $0x10] sm:$0xff] }
  0x5a   :  { %1564 = vmatpush3.bf16.msra.mxu1 %v1694_v15  ;;  %v1726_v52 = vld [vmem:[#allocation5 + $0x128] sm:$0xff]   ;;  %v1411_v53 = vcombine.high %v86_v51, %v86_v51  ;;  %v1734_v54 = vld [vmem:[#allocation2 + $0x18] ss:$0 sps:$4 sm:$0xff]   ;;  %v1727_v55 = vld [vmem:[#allocation5 + $0x170] sm:$0xff]   ;;  %v1410_v59 = vcombine.low %v86_v51, %v86_v51 }
  0x5b   :  { %1565 = vmatprep.subr.bf16.mxu1 %v1697_v18  ;;  %v1728_v56 = vld [vmem:[#allocation5 + $0x130] sm:$0xff]   ;;  %v1729_v57 = vld [vmem:[#allocation5 + $0x178] sm:$0xff]   ;;  %v1735_v60 = vld [vmem:[#allocation7] sm:$0xff]  }
  0x5c   :  { %1544 = vmatpush3.bf16.msra.mxu0 %v1696_v17  ;;  %v1730_v58 = vld [vmem:[#allocation5 + $0x138] sm:$0xff]   ;;  %v1736_v61 = vld [vmem:[#allocation7 + $0x8] sm:$0xff]   ;;  %v1738_v63 = vld [vmem:[#allocation7 + $0x18] sm:$0xff]  }
  0x5d   :  { %1545 = vmatprep.subr.bf16.mxu0 %v1699_v20  ;;  %v1737_v62 = vld [vmem:[#allocation7 + $0x10] sm:$0xff]   ;;  %v1739_v0 = vld [vmem:[#allocation7 + $0x20] sm:$0xff]   ;;  %v1740_v1 = vld [vmem:[#allocation7 + $0x28] sm:$0xff]  }
  0x5e   :  { %1566 = vmatpush3.bf16.msra.mxu1 %v1698_v19  ;;  %v1741_v2 = vld [vmem:[#allocation7 + $0x30] sm:$0xff]   ;;  %v1742_v3 = vld [vmem:[#allocation7 + $0x38] sm:$0xff]   ;;  %v1745_v5 = vld [vmem:[#allocation8 + $0x4] ss:$28 sps:$4 sm:$0xff]  }
  0x5f   :  { %1567 = vmatprep.subr.bf16.mxu1 %v1701_v22  ;;  %v1743_v4 = vld [vmem:[#allocation8] ss:$28 sps:$4 sm:$0xff]   ;;  %v1748_v6 = vld [vmem:[#allocation8 + $0xc] ss:$28 sps:$4 sm:$0xff]   ;;  %v1749_v8 = vld [vmem:[#allocation8 + $0x38] ss:$28 sps:$4 sm:$0xff]  }
  0x60   :  { %1546 = vmatpush3.bf16.msra.mxu0 %v1700_v21  ;;  %v1751_v7 = vld [vmem:[#allocation8 + $0x3c] ss:$28 sps:$4 sm:$0xff]   ;;  %v1757_v9 = vld [vmem:[#allocation8 + $0x74] ss:$28 sps:$4 sm:$0xff]   ;;  %v1763_v11 = vld [vmem:[#allocation8 + $0xac] ss:$28 sps:$4 sm:$0xff]  }
  0x61   :  { %1547 = vmatprep.subr.bf16.mxu0 %v1703_v24  ;;  %v1755_v10 = vld [vmem:[#allocation8 + $0x70] ss:$28 sps:$4 sm:$0xff]   ;;  %v1761_v12 = vld [vmem:[#allocation8 + $0xa8] ss:$28 sps:$4 sm:$0xff]   ;;  %v1767_v14 = vld [vmem:[#allocation8 + $0xe0] ss:$28 sps:$4 sm:$0xff]  }
  0x62   :  { %1568 = vmatpush3.bf16.msra.mxu1 %v1702_v23  ;;  %v1769_v13 = vld [vmem:[#allocation8 + $0xe4] ss:$28 sps:$4 sm:$0xff]   ;;  %v1775_v15 = vld [vmem:[#allocation8 + $0x11c] ss:$28 sps:$4 sm:$0xff]   ;;  %v1781_v17 = vld [vmem:[#allocation8 + $0x154] ss:$28 sps:$4 sm:$0xff]  }
  0x63   :  { %1569 = vmatprep.subr.bf16.mxu1 %v1705_v26  ;;  %v1773_v16 = vld [vmem:[#allocation8 + $0x118] ss:$28 sps:$4 sm:$0xff]   ;;  %v1779_v18 = vld [vmem:[#allocation8 + $0x150] ss:$28 sps:$4 sm:$0xff]   ;;  %v1405_v20 = vld [vmem:[%s2121_s2] ss:$0 sm:$0xff] }
  0x64   :  { %1548 = vmatpush3.bf16.msra.mxu0 %v1704_v25  ;;  %v1766_v51 = vld [vmem:[#allocation8 + $0xb4] ss:$28 sps:$4 sm:$0xff]  }
  0x65   :  { %1549 = vmatprep.subr.bf16.mxu0 %v1707_v28 }
  0x66   :  { %1570 = vmatpush3.bf16.msra.mxu1 %v1706_v27 }
  0x67   :  { %1571 = vmatprep.subr.bf16.mxu1 %v1709_v30 }
  0x68   :  { %1550 = vmatpush3.bf16.msra.mxu0 %v1708_v29 }
  0x69   :  { %1579 = vmatprep.subr.bf16.mxu0 %v1713_v35 }
  0x6a   :  { %1572 = vmatpush3.bf16.msra.mxu1 %v1712_v34 }
  0x6b   :  { %547 = vmatmul.mubr.bf16.vlgmr.msra.gmra.mrb[0].mxu0 %v1406_v32  ;;  %1621 = vmatprep.subr.bf16.mxu1 %v1977_v43 }
  0x6c   :  { %1580 = vmatpush3.bf16.msra.mxu0 %v1716_v39  ;;  %626 = vmatprep.mubr.bf16.mxu0 %v1411_v53  ;;  %v1772_v53 = vld [vmem:[#allocation8 + $0xec] ss:$28 sps:$4 sm:$0xff]  }
  0x6d   :  { %587 = vmatmul.mubr.bf16.vlgmr.msra.gmra.mrb[0].mxu1 %v1408_v37  ;;  %1581 = vmatprep.subr.bf16.mxu0 %v1717_v40 }
  0x6e   :  { %1623 = vmatprep.mubr.msk.bf16.mxu1 %vm1978_vm0, %v1977_v43  ;;  %1622 = vmatpush3.bf16.msra.mxu1 %v1731_v50  ;;  %v1758_v50 = vld [vmem:[#allocation8 + $0x78] ss:$28 sps:$4 sm:$0xff]  }
  0x6f   :  { %1627 = vmatprep.subr.bf16.mxu1 %v1977_v43 }
  0x70   :  { %1582 = vmatpush3.bf16.msra.mxu0 %v1718_v41 }
  0x71   :  { %1583 = vmatprep.subr.bf16.mxu0 %v1719_v42 }
  0x74   :  { %1584 = vmatpush3.bf16.msra.mxu0 %v1720_v44 }
  0x75   :  { %1585 = vmatprep.subr.bf16.mxu0 %v1721_v45  ;;  %1624 = vmatmul.mubr.msk.bf16.vlgmr.msra.gmra.mrb[4].mxu1 %vm510_vm1, %v1734_v54  ;;  %v1746_v45 = vld [vmem:[#allocation8 + $0x8] ss:$28 sps:$4 sm:$0xff]  }
  0x76   :  { %1643 = vmatprep.mubr.msk.bf16.mxu1 %vm1978_vm0, %v1977_v43  ;;  %1628 = vmatpush3.bf16.msra.mxu1 %v1735_v60  ;;  %v1770_v54 = vld [vmem:[#allocation8 + $0xe8] ss:$28 sps:$4 sm:$0xff]   ;;  %v1790_v60 = vld [vmem:[#allocation8 + $0x194] ss:$28 sps:$4 sm:$0xff]  }
  0x77   :  { %1629 = vmatprep.subr.bf16.mxu1 %v1977_v43 }
  0x78   :  { %1586 = vmatpush3.bf16.msra.mxu0 %v1722_v46 }
  0x79   :  { %1587 = vmatprep.subr.bf16.mxu0 %v1723_v47  ;;  %v1754_v47 = vld [vmem:[#allocation8 + $0x44] ss:$28 sps:$4 sm:$0xff]  }
  0x7a   :  { %1630 = vmatpush3.bf16.msra.mxu1 %v1736_v61  ;;  %v1785_v61 = vld [vmem:[#allocation8 + $0x188] ss:$28 sps:$4 sm:$0xff]  }
  0x7b   :  { %1631 = vmatprep.subr.bf16.mxu1 %v1977_v43 }
  0x7c   :  { %1588 = vmatpush3.bf16.msra.mxu0 %v1724_v48  ;;  %v1752_v48 = vld [vmem:[#allocation8 + $0x40] ss:$28 sps:$4 sm:$0xff]  }
  0x7d   :  { %1589 = vmatprep.subr.bf16.mxu0 %v1725_v49  ;;  %v1760_v49 = vld [vmem:[#allocation8 + $0x7c] ss:$28 sps:$4 sm:$0xff]  }
  0x7e   :  { %1632 = vmatpush3.bf16.msra.mxu1 %v1737_v62  ;;  %v1788_v62 = vld [vmem:[#allocation8 + $0x190] ss:$28 sps:$4 sm:$0xff]  }
  0x7f   :  { %1633 = vmatprep.subr.bf16.mxu1 %v1977_v43 }
  0x80   :  { %1590 = vmatpush3.bf16.msra.mxu0 %v1726_v52  ;;  %v1764_v52 = vld [vmem:[#allocation8 + $0xb0] ss:$28 sps:$4 sm:$0xff]  }
  0x81   :  { %1591 = vmatprep.subr.bf16.mxu0 %v1727_v55  ;;  %v1778_v55 = vld [vmem:[#allocation8 + $0x124] ss:$28 sps:$4 sm:$0xff]  }
  0x82   :  { %1634 = vmatpush3.bf16.msra.mxu1 %v1738_v63  ;;  %v1793_v63 = vld [vmem:[#allocation8 + $0x14] ss:$28 sps:$4 sm:$0xff]  }
  0x83   :  { %1635 = vmatprep.subr.bf16.mxu1 %v1977_v43 }
  0x84   :  { %1592 = vmatpush3.bf16.msra.mxu0 %v1728_v56  ;;  %v1776_v56 = vld [vmem:[#allocation8 + $0x120] ss:$28 sps:$4 sm:$0xff]  }
  0x85   :  { %1593 = vmatprep.subr.bf16.mxu0 %v1729_v57  ;;  %v1784_v57 = vld [vmem:[#allocation8 + $0x15c] ss:$28 sps:$4 sm:$0xff]  }
  0x86   :  { %1636 = vmatpush3.bf16.msra.mxu1 %v1739_v0  ;;  %v1979_v0 = vmov 0  }
  0x87   :  { %1637 = vmatprep.subr.bf16.mxu1 %v1977_v43 }
  0x88   :  { %1594 = vmatpush3.bf16.msra.mxu0 %v1730_v58  ;;  %v1782_v58 = vld [vmem:[#allocation8 + $0x158] ss:$28 sps:$4 sm:$0xff]  }
  0x89   :  { %1176 = vmatprep.subr.bf16.mxu0 %v1745_v5 }
  0x8a   :  { %1638 = vmatpush3.bf16.msra.mxu1 %v1740_v1  ;;  %v1463_v1 = vld [vmem:[%s2123_s4] ss:$0 sm:$0xff] }
  0x8b   :  { %627 = vmatmul.mubr.bf16.vlgmr.msra.gmra.mrb[4].mxu0 %v1410_v59  ;;  %1639 = vmatprep.subr.bf16.mxu1 %v1977_v43  ;;  %v1787_v59 = vld [vmem:[#allocation8 + $0x18c] ss:$28 sps:$4 sm:$0xff]  }
  0x8c   :  { %1177 = vmatpush1.bf16.msra.mxu0 %v1743_v4  ;;  %1208 = vmatprep.mubr.bf16.mxu0 %v1979_v0 }
  0x8d   :  { %1178 = vmatprep.subr.bf16.mxu0 %v1751_v7 }
  0x8e   :  { %1640 = vmatpush3.bf16.msra.mxu1 %v1741_v2 }
  0x8f   :  { %1641 = vmatprep.subr.bf16.mxu1 %v1977_v43 }
  0x90   :  { %1179 = vmatpush1.bf16.msra.mxu0 %v1749_v8  ;;  %v1791_v8 = vld [vmem:[#allocation8 + $0x10] ss:$28 sps:$4 sm:$0xff]  }
  0x91   :  { %1180 = vmatprep.subr.bf16.mxu0 %v1757_v9  ;;  %v1794_v9 = vld [vmem:[#allocation8 + $0x18] ss:$28 sps:$4 sm:$0xff]  }
  0x92   :  { %1642 = vmatpush3.bf16.msra.mxu1 %v1742_v3 }
  0x93   :  { %1217 = vmatprep.subr.bf16.mxu1 %v1748_v6 }
  0x94   :  { %1181 = vmatpush1.bf16.msra.mxu0 %v1755_v10 }
  0x95   :  { %1182 = vmatprep.subr.bf16.mxu0 %v1763_v11  ;;  %v1797_v11 = vld [vmem:[#allocation8 + $0x4c] ss:$28 sps:$4 sm:$0xff]  }
  0x98   :  { %1183 = vmatpush1.bf16.msra.mxu0 %v1761_v12  ;;  %v1795_v12 = vld [vmem:[#allocation8 + $0x48] ss:$28 sps:$4 sm:$0xff]  }
  0x99   :  { %1184 = vmatprep.subr.bf16.mxu0 %v1769_v13  ;;  %v1798_v13 = vld [vmem:[#allocation8 + $0x50] ss:$28 sps:$4 sm:$0xff]  }
  0x9c   :  { %1185 = vmatpush1.bf16.msra.mxu0 %v1767_v14  ;;  %v1801_v14 = vld [vmem:[#allocation8 + $0x84] ss:$28 sps:$4 sm:$0xff]  }
  0x9d   :  { %1186 = vmatprep.subr.bf16.mxu0 %v1775_v15  ;;  %v1799_v15 = vld [vmem:[#allocation8 + $0x80] ss:$28 sps:$4 sm:$0xff]  }
  0xa0   :  { %1187 = vmatpush1.bf16.msra.mxu0 %v1773_v16  ;;  %v1802_v16 = vld [vmem:[#allocation8 + $0x88] ss:$28 sps:$4 sm:$0xff]  }
  0xa1   :  { %1188 = vmatprep.subr.bf16.mxu0 %v1781_v17  ;;  %v1805_v17 = vld [vmem:[#allocation8 + $0xbc] ss:$28 sps:$4 sm:$0xff]  }
  0xa4   :  { %1189 = vmatpush1.bf16.msra.mxu0 %v1779_v18  ;;  %v1803_v18 = vld [vmem:[#allocation8 + $0xb8] ss:$28 sps:$4 sm:$0xff]  }
  0xa5   :  { %1190 = vmatprep.subr.bf16.mxu0 %v1787_v59 }
  0xa8   :  { %1191 = vmatpush1.bf16.msra.mxu0 %v1785_v61 }
  0xa9   :  { %1258 = vmatprep.subr.bf16.mxu0 %v1793_v63 }
 0x13e   :  { %v1551_v19 = vpop.f32.mrb[0].mxu0 }
 0x13f   :  { %v1552_v21 = vpop.f32.mrb[1].mxu0 }
 0x140   :  { %v1553_v22 = vadd.f32 %v1552_v21, %v1551_v19  ;;  %v1554_v23 = vpop.f32.mrb[2].mxu0  ;;  %v1573_v24 = vpop.f32.mrb[0].mxu1  ;;  %v1806_v19 = vld [vmem:[#allocation8 + $0xc0] ss:$28 sps:$4 sm:$0xff]   ;;  %v1807_v21 = vld [vmem:[#allocation8 + $0xf0] ss:$28 sps:$4 sm:$0xff]  }
 0x141   :  { %v1555_v25 = vpop.f32.mrb[3].mxu0  ;;  %v1574_v26 = vpop.f32.mrb[1].mxu1  ;;  %v1813_v23 = vld [vmem:[#allocation8 + $0x12c] ss:$28 sps:$4 sm:$0xff]  }
 0x142   :  { %v549_v27 = vadd.f32 %v1553_v22, %v1405_v20  ;;  %v1575_v28 = vadd.f32 %v1574_v26, %v1573_v24  ;;  %v1576_v29 = vpop.f32.mrb[2].mxu1  ;;  %v1809_v20 = vld [vmem:[#allocation8 + $0xf4] ss:$28 sps:$4 sm:$0xff]   ;;  %v1811_v24 = vld [vmem:[#allocation8 + $0x128] ss:$28 sps:$4 sm:$0xff]  }
 0x143   :  { %v1577_v30 = vpop.f32.mrb[3].mxu1  ;;  %v1810_v22 = vld [vmem:[#allocation8 + $0xf8] ss:$28 sps:$4 sm:$0xff]   ;;  %v1814_v25 = vld [vmem:[#allocation8 + $0x130] ss:$28 sps:$4 sm:$0xff]  }
 0x144   :  { %v589_v31 = vadd.f32 %v1575_v28, %v549_v27  ;;  %v1817_v26 = vld [vmem:[#allocation8 + $0x164] ss:$28 sps:$4 sm:$0xff]   ;;  %v1821_v29 = vld [vmem:[#allocation8 + $0x19c] ss:$28 sps:$4 sm:$0xff]  }
 0x145   :  { %v1815_v27 = vld [vmem:[#allocation8 + $0x160] ss:$28 sps:$4 sm:$0xff]   ;;  %v1818_v28 = vld [vmem:[#allocation8 + $0x168] ss:$28 sps:$4 sm:$0xff]   ;;  %v1819_v30 = vld [vmem:[#allocation8 + $0x198] ss:$28 sps:$4 sm:$0xff]  }
 0x148   :  { %v668_v32 = vpop.f32.mrb[4].mxu1 }
 0x149   :  { %v1625_v33 = vpop.f32.mrb[5].mxu1 }
 0x14a   :  { %v671_v34 = vpop.f32.mrb[6].mxu1 }
 0x14b   :  { %v1626_v35 = vpop.f32.mrb[7].mxu1 }
 0x15e   :  { %v1595_v36 = vpop.f32.mrb[4].mxu0 }
 0x15f   :  { %v1596_v37 = vpop.f32.mrb[5].mxu0 }
 0x160   :  { %v1597_v38 = vadd.f32 %v1596_v37, %v1595_v36  ;;  %v1598_v39 = vpop.f32.mrb[6].mxu0  ;;  %v83_v36 = vld [vmem:[%s2125_s6] sm:$0xff]  ;;  %s1980_s6 = smov [#allocation10]  }
 0x161   :  { %v1599_v40 = vpop.f32.mrb[7].mxu0  ;;  %s1394_s29 = sshll.u32 %s1980_s6, 4  ;;  %s1395_s29 = int_to_ptr.vmem [resolvable:$true] %s1394_s29 }
 0x162   :  { %v629_v41 = vadd.f32 %v1597_v38, %v589_v31  ;;  %v1822_v31 = vld [vmem:[#allocation8 + $0x1a0] ss:$28 sps:$4 sm:$0xff]   ;;  %s1939_s30 = scalar_lea.vmem %s1395_s29, 896  ;;  %p1944_p5 = scmp.lt.s32.totalorder %s1395_s29, %s1395_s29 }
 0x163   :  { %p1940_p4 = scmp.ne.s32.totalorder %s1395_s29, %s1939_s30  ;;  %p1945_p6 = scmp.lt.s32.totalorder %s1939_s30, %s1939_s30 }
 0x164   :  { %v669_v42 = vadd.f32 %v668_v32, %v629_v41  ;;  %v853_v32 = vlaneseq }
 0x165   :  { %p1946_p7 = por %p1945_p6, %p1944_p5 }
 0x166   :  { %v674_v44 = vmax.f32 %v669_v42, 0.0  ;;  %v854_v33 = vshrl.u32 %v853_v32, 7 }
 0x167   :  { %p1947_p8 = pnand %p1946_p7, %p1940_p4 }
 0x168   :  { %v675_v46 = vpack.c.bf16 %v674_v44, %v674_v44  ;;  %v855_v34 = vsub.s32 0, %v854_v33  ;;  %v863_v35 = vsub.s32 2, %v854_v33  ;;  %v859_v37 = vsub.s32 1, %v854_v33 }
 0x169   :  { %v867_v38 = vsub.s32 3, %v854_v33 }
 0x16a   :  { %1644 = vmatmul.mubr.bf16.vlgmr.msra.gmra.mrb[8].mxu1 %v675_v46  ;;  %v856_v39 = vrot.slane %v83_v36, %v855_v34  ;;  %v864_v40 = vrot.slane %v83_v36, %v863_v35  ;;  %v860_v41 = vrot.slane %v83_v36, %v859_v37 }
 0x16b   :  { %1218 = vmatpush1.bf16.msra.mxu1 %v1746_v45  ;;  %1249 = vmatprep.mubr.bf16.mxu1 %v1979_v0  ;;  %v868_v42 = vrot.slane %v83_v36, %v867_v38 }
 0x16c   :  { %1219 = vmatprep.subr.bf16.mxu1 %v1754_v47 }
 0x16f   :  { %1220 = vmatpush1.bf16.msra.mxu1 %v1752_v48 }
 0x170   :  { %1221 = vmatprep.subr.bf16.mxu1 %v1760_v49 }
 0x173   :  { %1222 = vmatpush1.bf16.msra.mxu1 %v1758_v50 }
 0x174   :  { %1223 = vmatprep.subr.bf16.mxu1 %v1766_v51 }
 0x177   :  { %1224 = vmatpush1.bf16.msra.mxu1 %v1764_v52 }
 0x178   :  { %1225 = vmatprep.subr.bf16.mxu1 %v1772_v53 }
 0x17b   :  { %1226 = vmatpush1.bf16.msra.mxu1 %v1770_v54 }
 0x17c   :  { %1227 = vmatprep.subr.bf16.mxu1 %v1778_v55 }
 0x17f   :  { %1228 = vmatpush1.bf16.msra.mxu1 %v1776_v56 }
 0x180   :  { %1229 = vmatprep.subr.bf16.mxu1 %v1784_v57 }
 0x183   :  { %1230 = vmatpush1.bf16.msra.mxu1 %v1782_v58 }
 0x184   :  { %1231 = vmatprep.subr.bf16.mxu1 %v1790_v60 }
 0x187   :  { %1232 = vmatpush1.bf16.msra.mxu1 %v1788_v62 }
 0x188   :  { %1647 = vmatprep.subr.bf16.mxu1 %v1977_v43 }
 0x23d   :  { %v780_v2 = vpop.f32.mrb[8].mxu1 }
 0x23e   :  { %v781_v3 = vadd.f32 %v1463_v1, %v780_v2  ;;  %v1645_v4 = vpop.f32.mrb[9].mxu1 }
 0x23f   :  { %v783_v5 = vpop.f32.mrb[10].mxu1  ;;  %v879_v4 = vsub.s32 6, %v854_v33 }
 0x240   :  { %v786_v6 = vmax.f32 %v781_v3, 0.0  ;;  %v1646_v7 = vpop.f32.mrb[11].mxu1  ;;  %v871_v3 = vsub.s32 4, %v854_v33  ;;  %v875_v5 = vsub.s32 5, %v854_v33 }
 0x242   :  { %v787_v10 = vpack.c.bf16 %v786_v6, %v786_v6 }
 0x244   :  { %1209 = vmatmul.mubr.bf16.vlgmr.msra.gmra.mrb[8].mxu0 %v787_v10  ;;  %1250 = vmatmul.mubr.bf16.vlgmr.msra.gmra.mrb[12].mxu1 %v787_v10 }
 0x245   :  { %1259 = vmatpush1.bf16.msra.mxu0 %v1791_v8  ;;  %1648 = vmatpush3.bf16.msra.mxu1 %v1794_v9  ;;  %v872_v8 = vrot.slane %v83_v36, %v871_v3  ;;  %v880_v9 = vrot.slane %v83_v36, %v879_v4 }
 0x246   :  { %1260 = vmatprep.subr.bf16.mxu0 %v1797_v11  ;;  %1649 = vmatprep.subr.bf16.mxu1 %v1977_v43  ;;  %v876_v11 = vrot.slane %v83_v36, %v875_v5 }
 0x247   :  { %1290 = vmatprep.mubr.bf16.mxu0 %v1979_v0  ;;  %1663 = vmatprep.mubr.msk.bf16.mxu1 %vm1978_vm0, %v1977_v43 }
 0x249   :  { %1261 = vmatpush1.bf16.msra.mxu0 %v1795_v12  ;;  %1650 = vmatpush3.bf16.msra.mxu1 %v1798_v13 }
 0x24a   :  { %1262 = vmatprep.subr.bf16.mxu0 %v1801_v14  ;;  %1651 = vmatprep.subr.bf16.mxu1 %v1977_v43 }
 0x24d   :  { %1263 = vmatpush1.bf16.msra.mxu0 %v1799_v15  ;;  %1652 = vmatpush3.bf16.msra.mxu1 %v1802_v16 }
 0x24e   :  { %1264 = vmatprep.subr.bf16.mxu0 %v1805_v17  ;;  %1653 = vmatprep.subr.bf16.mxu1 %v1977_v43 }
 0x251   :  { %1265 = vmatpush1.bf16.msra.mxu0 %v1803_v18  ;;  %1654 = vmatpush3.bf16.msra.mxu1 %v1806_v19 }
 0x252   :  { %1266 = vmatprep.subr.bf16.mxu0 %v1809_v20  ;;  %1655 = vmatprep.subr.bf16.mxu1 %v1977_v43 }
 0x255   :  { %1267 = vmatpush1.bf16.msra.mxu0 %v1807_v21  ;;  %1656 = vmatpush3.bf16.msra.mxu1 %v1810_v22 }
 0x256   :  { %1268 = vmatprep.subr.bf16.mxu0 %v1813_v23  ;;  %1657 = vmatprep.subr.bf16.mxu1 %v1977_v43 }
 0x259   :  { %1269 = vmatpush1.bf16.msra.mxu0 %v1811_v24  ;;  %1658 = vmatpush3.bf16.msra.mxu1 %v1814_v25 }
 0x25a   :  { %1270 = vmatprep.subr.bf16.mxu0 %v1817_v26  ;;  %1659 = vmatprep.subr.bf16.mxu1 %v1977_v43 }
 0x25d   :  { %1271 = vmatpush1.bf16.msra.mxu0 %v1815_v27  ;;  %1660 = vmatpush3.bf16.msra.mxu1 %v1818_v28 }
 0x25e   :  { %1272 = vmatprep.subr.bf16.mxu0 %v1821_v29  ;;  %1661 = vmatprep.subr.bf16.mxu1 %v1977_v43 }
 0x261   :  { %1273 = vmatpush1.bf16.msra.mxu0 %v1819_v30  ;;  %1662 = vmatpush3.bf16.msra.mxu1 %v1822_v31 }
 0x264   :  { %1291 = vmatmul.mubr.bf16.vlgmr.msra.gmra.mrb[12].mxu0 %v787_v10  ;;  %1664 = vmatmul.mubr.bf16.vlgmr.msra.gmra.mrb[16].mxu1 %v787_v10 }
 0x317   :  { %v1210_v44 = vpop.f32.mrb[8].mxu0  ;;  %v1251_v43 = vpop.f32.mrb[12].mxu1 }
 0x318   :  { %v1211_v45 = vadd.f32 %v1210_v44, %v856_v39  ;;  %v1252_v46 = vadd.f32 %v1251_v43, %v864_v40  ;;  %v1212_v47 = vpop.f32.mrb[9].mxu0  ;;  %v1253_v48 = vpop.f32.mrb[13].mxu1 }
 0x319   :  { %v1213_v49 = vadd.f32 %v1212_v47, %v860_v41  ;;  %v1254_v50 = vadd.f32 %v1253_v48, %v868_v42  ;;  %v1214_v51 = vpop.f32.mrb[10].mxu0  ;;  %v1255_v52 = vpop.f32.mrb[14].mxu1 }
 0x31a   :  { %v1528_v53 = vmul.f32 -1.442695, %v1211_v45  ;;  %v1530_v54 = vmul.f32 -1.442695, %v1252_v46  ;;  %v1215_v55 = vpop.f32.mrb[11].mxu0  ;;  %v1256_v56 = vpop.f32.mrb[15].mxu1 }
 0x31b   :  { %v1529_v57 = vmul.f32 -1.442695, %v1213_v49  ;;  %v1531_v58 = vmul.f32 -1.442695, %v1254_v50 }
 0x31c   :  { %1823 = vpow2.f32 %v1528_v53 }
 0x31d   :  { %1825 = vpow2.f32 %v1530_v54 }
 0x31e   :  { %1827 = vpow2.f32 %v1529_v57 }
 0x31f   :  { %1829 = vpow2.f32 %v1531_v58 }
 0x326   :  { %v1824_v59 = vpop.eup %1823 }
 0x327   :  { %v1826_v60 = vpop.eup %1825  ;;  %v1360_v61 = vadd.f32 1.0, %v1824_v59 }
 0x328   :  { %v1828_v62 = vpop.eup %1827  ;;  %v1362_v63 = vadd.f32 1.0, %v1826_v60 }
 0x329   :  { %v1830_v0 = vpop.eup %1829  ;;  %1831 = vrcp.f32 %v1360_v61  ;;  %v1361_v1 = vadd.f32 1.0, %v1828_v62 }
 0x32a   :  { %1833 = vrcp.f32 %v1362_v63  ;;  %v1363_v2 = vadd.f32 1.0, %v1830_v0 }
 0x32b   :  { %1835 = vrcp.f32 %v1361_v1 }
 0x32c   :  { %1837 = vrcp.f32 %v1363_v2 }
 0x333   :  { %v1832_v6 = vpop.eup %1831 }
 0x334   :  { %v1834_v7 = vpop.eup %1833  ;;  %1381 = vst [vmem:[#allocation10] sm:$0xff] %v1832_v6 }
 0x335   :  { %v1836_v10 = vpop.eup %1835  ;;  %1383 = vst [vmem:[#allocation10 + $0x10] sm:$0xff] %v1834_v7 }
 0x336   :  { %v1838_v12 = vpop.eup %1837  ;;  %1382 = vst [vmem:[#allocation10 + $0x8] sm:$0xff] %v1836_v10 }
 0x337   :  { %1384 = vst [vmem:[#allocation10 + $0x18] sm:$0xff] %v1838_v12  ;;  %v1292_v13 = vpop.f32.mrb[12].mxu0  ;;  %v1333_v14 = vpop.f32.mrb[16].mxu1 }
 0x338   :  { %v1293_v15 = vadd.f32 %v1292_v13, %v872_v8  ;;  %v1334_v16 = vadd.f32 %v1333_v14, %v880_v9  ;;  %v1294_v17 = vpop.f32.mrb[13].mxu0  ;;  %v1665_v18 = vpop.f32.mrb[17].mxu1 }
 0x339   :  { %v1295_v19 = vadd.f32 %v1294_v17, %v876_v11  ;;  %v1296_v20 = vpop.f32.mrb[14].mxu0  ;;  %v1336_v21 = vpop.f32.mrb[18].mxu1 }
 0x33a   :  { %v1532_v22 = vmul.f32 -1.442695, %v1293_v15  ;;  %v1534_v23 = vmul.f32 -1.442695, %v1334_v16  ;;  %v1297_v24 = vpop.f32.mrb[15].mxu0  ;;  %v1666_v25 = vpop.f32.mrb[19].mxu1 }
 0x33b   :  { %v1533_v26 = vmul.f32 -1.442695, %v1295_v19 }
 0x33c   :  { %1839 = vpow2.f32 %v1532_v22 }
 0x33d   :  { %1841 = vpow2.f32 %v1534_v23 }
 0x33e   :  { %1843 = vpow2.f32 %v1533_v26 }
 0x346   :  { %v1840_v27 = vpop.eup %1839 }
 0x347   :  { %v1842_v28 = vpop.eup %1841  ;;  %v1364_v29 = vadd.f32 1.0, %v1840_v27 }
 0x348   :  { %v1844_v30 = vpop.eup %1843  ;;  %v1366_v31 = vadd.f32 1.0, %v1842_v28 }
 0x349   :  { %1845 = vrcp.f32 %v1364_v29  ;;  %v1365_v32 = vadd.f32 1.0, %v1844_v30 }
 0x34a   :  { %1847 = vrcp.f32 %v1366_v31 }
 0x34b   :  { %1849 = vrcp.f32 %v1365_v32 }
 0x353   :  { %v1846_v33 = vpop.eup %1845 }
 0x354   :  { %v1848_v34 = vpop.eup %1847  ;;  %1385 = vst [vmem:[#allocation10 + $0x20] sm:$0xff] %v1846_v33 }
 0x355   :  { %v1850_v35 = vpop.eup %1849  ;;  %1387 = vst [vmem:[#allocation10 + $0x30] sm:$0xff] %v1848_v34 }
 0x356   :  { %1386 = vst [vmem:[#allocation10 + $0x28] sm:$0xff] %v1850_v35 }
 0x357   :  { %1950 = shalt.err (!%p1947_p8)
}
 0x358   :  { %s1951_s10 = scalar_lea.hbm %s2126_s7, 896 }
 0x359   :  { %p1952_p9 = scmp.ne.s32.totalorder %s2126_s7, %s1951_s10  ;;  %p1955_p10 = scmp.lt.u32.totalorder %s1951_s10, %s2126_s7 }
 0x35b   :  { %p1957_p11 = pnand %p1955_p10, %p1952_p9 }
 0x35d   :  { %1960 = shalt.err (!%p1957_p11)
}
 0x35e   :  { %1397 = dma.vmem_to_hbm [thread:$0]  %s1395_s29, 896, %s2126_s7, [#allocation4]  }
 0x35f   :  { %1967 = dma.done.wait [#allocation4], 896  }
 0x360   :  { %1968 = vsyncadd [#allocation4], 4294966400 }
 0x361   :  { %1401 = vsyncpa [#allocation3], 1 }
 0x362   :  { %1402 = vsyncpa [#allocation6], 1 }
 0x363   :  { %1403 = vsyncpa [#allocation9], 1 }
 0x364   :  { %1404 = vsyncpa [#allocation4], 1 }

</bundles_post_ra>
